<compile_context>
chip_gen: v7x
topology: tpu7x:2x2x1
jax: 0.10.0
libtpu: 0.0.40
codegen_flags: <defaults>
</compile_context>

<pallas_src>
import functools

import jax
import jax.numpy as jnp
from jax import lax
from jax.experimental import pallas as pl
from jax.experimental.pallas import tpu as pltpu


def _round_up(c, m=128):
    return ((c + m - 1) // m) * m


def _row_tile(n):
    # 128-row slabs when possible, else a single full block (still legal:
    # block dim == full array dim).
    return 128 if n % 128 == 0 else n


def _vmem_budget(n, inc, hidden_pad, outc_pad, zc, tm):
    bf = 2  # bf16 bytes
    need = (
        2 * (n * inc * bf                      # X (double-buffered by pipeline)
             + hidden_pad * inc * bf           # W1
             + hidden_pad * 4                  # b1 (f32)
             + outc_pad * hidden_pad * bf      # W2
             + outc_pad * 4                    # b2 (f32)
             + tm * n * bf                     # P row slab
             + tm * outc_pad * 4)              # output tile (f32)
        + n * zc * bf                          # Z scratch
        + n * hidden_pad * bf                  # H scratch
    )
    return min(max(need + (8 << 20), 32 << 20), 48 << 20)


def _gcn_fused_kernel(x_ref, w1_ref, b1_ref, w2_ref, b2_ref, p_ref,
                      o_ref, z_ref, h_ref, *, hidden_pad, outc_pad, tm):
    layer = pl.program_id(0)   # 0: conv1 (+ReLU), 1: conv2
    i = pl.program_id(1)       # output row tile

    # ---- feature transform Z for the current layer, computed once ----------
    @pl.when(jnp.logical_and(layer == 0, i == 0))
    def _():
        z = lax.dot_general(
            x_ref[...], w1_ref[...],
            dimension_numbers=(((1,), (1,)), ((), ())),   # X @ W1^T, no transpose
            preferred_element_type=jnp.float32)
        z_ref[:, :hidden_pad] = (z + b1_ref[...]).astype(z_ref.dtype)

    @pl.when(jnp.logical_and(layer == 1, i == 0))
    def _():
        z = lax.dot_general(
            h_ref[...], w2_ref[...],
            dimension_numbers=(((1,), (1,)), ((), ())),   # H @ W2^T, no transpose
            preferred_element_type=jnp.float32)
        z_ref[:, :outc_pad] = (z + b2_ref[...]).astype(z_ref.dtype)

    # ---- propagation for this row slab: P[i*tm:(i+1)*tm, :] @ Z ------------
    @pl.when(layer == 0)
    def _():
        h = jnp.dot(p_ref[...], z_ref[:, :hidden_pad],
                    preferred_element_type=jnp.float32)
        row0 = pl.multiple_of(i * tm, tm)
        h_ref[pl.ds(row0, tm), :] = jnp.maximum(h, 0.0).astype(h_ref.dtype)
        # TODO(synk): nn.Dropout is identity in eval mode; training-mode
        # dropout (pltpu.prng_random_bits mask) not implemented here.
        o_ref[...] = jnp.zeros_like(o_ref)   # placeholder; overwritten by layer 1

    @pl.when(layer == 1)
    def _():
        out = jnp.dot(p_ref[...], z_ref[:, :outc_pad],
                      preferred_element_type=jnp.float32)
        o_ref[...] = out.astype(o_ref.dtype)


def trainable_gcn_forward(x, prop, w1, b1, w2, b2):
    n, inc = x.shape
    hidden = w1.shape[0]
    outc = w2.shape[0]
    hidden_pad = _round_up(hidden)
    outc_pad = _round_up(outc)
    zc = max(hidden_pad, outc_pad)
    tm = _row_tile(n)
    n_tiles = n // tm

    bf16 = jnp.bfloat16
    x_bf = x.astype(bf16)
    p_bf = prop.astype(bf16)

    # Zero-pad hidden/outc to lane width 128: padded rows/cols stay exact zeros
    # through bias-add / ReLU / matmul, so results are identical once the
    # output is sliced back to outc.
    w1_p = jnp.pad(w1, ((0, hidden_pad - hidden), (0, 0))).astype(bf16)
    b1_p = jnp.pad(b1, ((0, 0), (0, hidden_pad - hidden)))
    w2_p = jnp.pad(w2, ((0, outc_pad - outc), (0, hidden_pad - hidden))).astype(bf16)
    b2_p = jnp.pad(b2, ((0, 0), (0, outc_pad - outc)))

    kernel = functools.partial(_gcn_fused_kernel,
                               hidden_pad=hidden_pad, outc_pad=outc_pad, tm=tm)

    out = pl.pallas_call(
        kernel,
        out_shape=jax.ShapeDtypeStruct((n, outc_pad), jnp.float32),
        grid=(2, n_tiles),  # (layer, row tile); last axis iterates fastest
        in_specs=[
            pl.BlockSpec((n, inc), lambda l, i: (0, 0)),                # X (resident)
            pl.BlockSpec((hidden_pad, inc), lambda l, i: (0, 0)),       # W1
            pl.BlockSpec((1, hidden_pad), lambda l, i: (0, 0)),         # b1
            pl.BlockSpec((outc_pad, hidden_pad), lambda l, i: (0, 0)),  # W2
            pl.BlockSpec((1, outc_pad), lambda l, i: (0, 0)),           # b2
            pl.BlockSpec((tm, n), lambda l, i: (i, 0)),                 # P row slab
        ],
        out_specs=pl.BlockSpec((tm, outc_pad), lambda l, i: (i, 0)),
        scratch_shapes=[
            pltpu.VMEM((n, zc), bf16),           # Z of the current layer
            pltpu.VMEM((n, hidden_pad), bf16),   # H = ReLU(P @ Z1)
        ],
        compiler_params=pltpu.CompilerParams(
            # scratch carries state across grid steps -> axes must be sequential
            dimension_semantics=("arbitrary", "arbitrary"),
            vmem_limit_bytes=_vmem_budget(n, inc, hidden_pad, outc_pad, zc, tm)),
    )(x_bf, w1_p, b1_p, w2_p, b2_p, p_bf)

    return out[:, :outc]


def init_linear(key, out_features, in_features):
    # Matches nn.Linear.reset_parameters: U(-1/sqrt(fan_in), 1/sqrt(fan_in))
    kw, kb = jax.random.split(key)
    bound = 1.0 / jnp.sqrt(jnp.float32(in_features))
    w = jax.random.uniform(kw, (out_features, in_features), jnp.float32,
                           minval=-bound, maxval=bound)
    b = jax.random.uniform(kb, (1, out_features), jnp.float32,
                           minval=-bound, maxval=bound)
    return w, b


if __name__ == "__main__":
    key = jax.random.PRNGKey(0)
    k_x, k_a, k_l1, k_l2 = jax.random.split(key, 4)

    N, INC, HIDDEN, OUTC = 128, 64, 32, 16

    x = jax.random.normal(k_x, (N, INC), jnp.float32)

    # Symmetric normalized adjacency (deterministic, built in-script).
    a = (jax.random.uniform(k_a, (N, N)) < 0.05).astype(jnp.float32)
    a = jnp.maximum(a, a.T) + jnp.eye(N, dtype=jnp.float32)
    deg = jnp.sum(a, axis=1)
    d_inv_sqrt = 1.0 / jnp.sqrt(deg)
    prop = a * d_inv_sqrt[:, None] * d_inv_sqrt[None, :]

    w1, b1 = init_linear(k_l1, HIDDEN, INC)
    w2, b2 = init_linear(k_l2, OUTC, HIDDEN)

    out = trainable_gcn_forward(x, prop, w1, b1, w2, b2)
    out = jax.block_until_ready(out)
    assert out.shape == (N, OUTC)

    # Reference 1: bf16-emulated (same quantization points as the kernel).
    bf = jnp.bfloat16
    xb, pb = x.astype(bf), prop.astype(bf)
    z1_r = jnp.dot(xb, w1.astype(bf).T, preferred_element_type=jnp.float32) + b1
    h_r = jnp.maximum(
        jnp.dot(pb, z1_r.astype(bf), preferred_element_type=jnp.float32), 0.0
    ).astype(bf)
    z2_r = jnp.dot(h_r, w2.astype(bf).T, preferred_element_type=jnp.float32) + b2
    ref_bf = jnp.dot(pb, z2_r.astype(bf), preferred_element_type=jnp.float32)
    assert jnp.allclose(out, ref_bf, atol=5e-3, rtol=5e-3)

    # Reference 2: pure f32 math (looser tolerance due to bf16 operands).
    ref_f32 = prop @ (jnp.maximum(prop @ (x @ w1.T + b1), 0.0) @ w2.T + b2)
    assert jnp.allclose(out, ref_f32, atol=5e-2, rtol=5e-2)

    print("KERNEL_OK")
</pallas_src>

<mosaic_0001>
module attributes {stable_mosaic.version = 11 : i64} {
  func.func @_gcn_fused_kernel(%arg0: i32, %arg1: i32, %arg2: memref<128x64xbf16, #tpu.memory_space<vmem>>, %arg3: memref<128x64xbf16, #tpu.memory_space<vmem>>, %arg4: memref<1x128xf32, #tpu.memory_space<vmem>>, %arg5: memref<128x128xbf16, #tpu.memory_space<vmem>>, %arg6: memref<1x128xf32, #tpu.memory_space<vmem>>, %arg7: memref<128x128xbf16, #tpu.memory_space<vmem>>, %arg8: memref<128x128xf32, #tpu.memory_space<vmem>>, %arg9: memref<128x128xbf16, #tpu.memory_space<vmem>>, %arg10: memref<128x128xbf16, #tpu.memory_space<vmem>>) attributes {dimension_semantics = [#tpu.dimension_semantics<arbitrary>, #tpu.dimension_semantics<arbitrary>], iteration_bounds = array<i64: 2, 1>, scalar_prefetch = 0 : i64, scratch_operands = 2 : i64, tpu.core_type = #tpu.core_type<tc>, window_params = [{pipeline_mode = #tpu.pipeline_mode<synchronous>, transform_indices = @transform_0, window_bounds = array<i64: 128, 64>}, {pipeline_mode = #tpu.pipeline_mode<synchronous>, transform_indices = @transform_1, window_bounds = array<i64: 128, 64>}, {pipeline_mode = #tpu.pipeline_mode<synchronous>, transform_indices = @transform_2, window_bounds = array<i64: 1, 128>}, {pipeline_mode = #tpu.pipeline_mode<synchronous>, transform_indices = @transform_3, window_bounds = array<i64: 128, 128>}, {pipeline_mode = #tpu.pipeline_mode<synchronous>, transform_indices = @transform_4, window_bounds = array<i64: 1, 128>}, {transform_indices = @transform_5, window_bounds = array<i64: 128, 128>}, {transform_indices = @transform_6, window_bounds = array<i64: 128, 128>}]} {
    %c0_i32 = arith.constant 0 : i32
    %0 = arith.cmpi eq, %arg0, %c0_i32 : i32
    %c0_i32_0 = arith.constant 0 : i32
    %1 = arith.cmpi eq, %arg1, %c0_i32_0 : i32
    %2 = arith.andi %0, %1 : i1
    %3 = arith.extui %2 : i1 to i32
    %c0_i32_1 = arith.constant 0 : i32
    %4 = arith.cmpi ne, %3, %c0_i32_1 : i32
    scf.if %4 {
      %c0 = arith.constant 0 : index
      %c0_8 = arith.constant 0 : index
      %16 = vector.load %arg2[%c0, %c0_8] : memref<128x64xbf16, #tpu.memory_space<vmem>>, vector<128x64xbf16>
      %c0_9 = arith.constant 0 : index
      %c0_10 = arith.constant 0 : index
      %17 = vector.load %arg3[%c0_9, %c0_10] : memref<128x64xbf16, #tpu.memory_space<vmem>>, vector<128x64xbf16>
      %cst = arith.constant dense<0.000000e+00> : vector<128x128xf32>
      %18 = tpu.matmul %16, %17, %cst {dimension_numbers = #tpu.dot_dimension_numbers<[1], [1], [0], [0], [0, 0, 1, 0], [], []>} : vector<128x64xbf16>, vector<128x64xbf16>, vector<128x128xf32> -> vector<128x128xf32>
      %c0_11 = arith.constant 0 : index
      %c0_12 = arith.constant 0 : index
      %19 = vector.load %arg4[%c0_11, %c0_12] : memref<1x128xf32, #tpu.memory_space<vmem>>, vector<1x128xf32>
      %20 = vector.broadcast %19 : vector<1x128xf32> to vector<128x128xf32>
      %21 = arith.addf %18, %20 : vector<128x128xf32>
      %22 = arith.truncf %21 : vector<128x128xf32> to vector<128x128xbf16>
      %c0_13 = arith.constant 0 : index
      %c0_14 = arith.constant 0 : index
      %23 = vector.load %arg9[%c0_13, %c0_14] : memref<128x128xbf16, #tpu.memory_space<vmem>>, vector<128x128xbf16>
      tpu.vector_store %arg9[%c0_13, %c0_14], %22 {strides = array<i32>} : memref<128x128xbf16, #tpu.memory_space<vmem>>, vector<128x128xbf16>,
    } else {
    }
    %c1_i32 = arith.constant 1 : i32
    %5 = arith.cmpi eq, %arg0, %c1_i32 : i32
    %c0_i32_2 = arith.constant 0 : i32
    %6 = arith.cmpi eq, %arg1, %c0_i32_2 : i32
    %7 = arith.andi %5, %6 : i1
    %8 = arith.extui %7 : i1 to i32
    %c0_i32_3 = arith.constant 0 : i32
    %9 = arith.cmpi ne, %8, %c0_i32_3 : i32
    scf.if %9 {
      %c0 = arith.constant 0 : index
      %c0_8 = arith.constant 0 : index
      %16 = vector.load %arg10[%c0, %c0_8] : memref<128x128xbf16, #tpu.memory_space<vmem>>, vector<128x128xbf16>
      %c0_9 = arith.constant 0 : index
      %c0_10 = arith.constant 0 : index
      %17 = vector.load %arg5[%c0_9, %c0_10] : memref<128x128xbf16, #tpu.memory_space<vmem>>, vector<128x128xbf16>
      %cst = arith.constant dense<0.000000e+00> : vector<128x128xf32>
      %18 = tpu.matmul %16, %17, %cst {dimension_numbers = #tpu.dot_dimension_numbers<[1], [1], [0], [0], [0, 0, 1, 0], [], []>} : vector<128x128xbf16>, vector<128x128xbf16>, vector<128x128xf32> -> vector<128x128xf32>
      %c0_11 = arith.constant 0 : index
      %c0_12 = arith.constant 0 : index
      %19 = vector.load %arg6[%c0_11, %c0_12] : memref<1x128xf32, #tpu.memory_space<vmem>>, vector<1x128xf32>
      %20 = vector.broadcast %19 : vector<1x128xf32> to vector<128x128xf32>
      %21 = arith.addf %18, %20 : vector<128x128xf32>
      %22 = arith.truncf %21 : vector<128x128xf32> to vector<128x128xbf16>
      %c0_13 = arith.constant 0 : index
      %c0_14 = arith.constant 0 : index
      %23 = vector.load %arg9[%c0_13, %c0_14] : memref<128x128xbf16, #tpu.memory_space<vmem>>, vector<128x128xbf16>
      tpu.vector_store %arg9[%c0_13, %c0_14], %22 {strides = array<i32>} : memref<128x128xbf16, #tpu.memory_space<vmem>>, vector<128x128xbf16>,
    } else {
    }
    %c0_i32_4 = arith.constant 0 : i32
    %10 = arith.cmpi eq, %arg0, %c0_i32_4 : i32
    %11 = arith.extui %10 : i1 to i32
    %c0_i32_5 = arith.constant 0 : i32
    %12 = arith.cmpi ne, %11, %c0_i32_5 : i32
    scf.if %12 {
      %c0 = arith.constant 0 : index
      %c0_8 = arith.constant 0 : index
      %16 = vector.load %arg7[%c0, %c0_8] : memref<128x128xbf16, #tpu.memory_space<vmem>>, vector<128x128xbf16>
      %c0_9 = arith.constant 0 : index
      %c0_10 = arith.constant 0 : index
      %17 = vector.load %arg9[%c0_9, %c0_10] : memref<128x128xbf16, #tpu.memory_space<vmem>>, vector<128x128xbf16>
      %cst = arith.constant dense<0.000000e+00> : vector<128x128xf32>
      %18 = tpu.matmul %16, %17, %cst {dimension_numbers = #tpu.dot_dimension_numbers<[1], [0], [0], [1], [0, 0, 1, 1], [], []>} : vector<128x128xbf16>, vector<128x128xbf16>, vector<128x128xf32> -> vector<128x128xf32>
      %c128_i32 = arith.constant 128 : i32
      %19 = arith.muli %arg1, %c128_i32 : i32
      %20 = tpu.assume_multiple %19, 128 : i32
      %cst_11 = arith.constant 0.000000e+00 : f32
      %21 = vector.broadcast %cst_11 : f32 to vector<128x128xf32>
      %22 = arith.maximumf %18, %21 : vector<128x128xf32>
      %23 = arith.truncf %22 : vector<128x128xf32> to vector<128x128xbf16>
      %24 = arith.index_cast %20 : i32 to index
      %c0_12 = arith.constant 0 : index
      %25 = vector.load %arg10[%24, %c0_12] : memref<128x128xbf16, #tpu.memory_space<vmem>>, vector<128x128xbf16>
      tpu.vector_store %arg10[%24, %c0_12], %23 {strides = array<i32>} : memref<128x128xbf16, #tpu.memory_space<vmem>>, vector<128x128xbf16>,
      %cst_13 = arith.constant 0.000000e+00 : f32
      %26 = vector.broadcast %cst_13 : f32 to vector<128x128xf32>
      %c0_14 = arith.constant 0 : index
      %c0_15 = arith.constant 0 : index
      %27 = vector.load %arg8[%c0_14, %c0_15] : memref<128x128xf32, #tpu.memory_space<vmem>>, vector<128x128xf32>
      tpu.vector_store %arg8[%c0_14, %c0_15], %26 {strides = array<i32>} : memref<128x128xf32, #tpu.memory_space<vmem>>, vector<128x128xf32>,
    } else {
    }
    %c1_i32_6 = arith.constant 1 : i32
    %13 = arith.cmpi eq, %arg0, %c1_i32_6 : i32
    %14 = arith.extui %13 : i1 to i32
    %c0_i32_7 = arith.constant 0 : i32
    %15 = arith.cmpi ne, %14, %c0_i32_7 : i32
    scf.if %15 {
      %c0 = arith.constant 0 : index
      %c0_8 = arith.constant 0 : index
      %16 = vector.load %arg7[%c0, %c0_8] : memref<128x128xbf16, #tpu.memory_space<vmem>>, vector<128x128xbf16>
      %c0_9 = arith.constant 0 : index
      %c0_10 = arith.constant 0 : index
      %17 = vector.load %arg9[%c0_9, %c0_10] : memref<128x128xbf16, #tpu.memory_space<vmem>>, vector<128x128xbf16>
      %cst = arith.constant dense<0.000000e+00> : vector<128x128xf32>
      %18 = tpu.matmul %16, %17, %cst {dimension_numbers = #tpu.dot_dimension_numbers<[1], [0], [0], [1], [0, 0, 1, 1], [], []>} : vector<128x128xbf16>, vector<128x128xbf16>, vector<128x128xf32> -> vector<128x128xf32>
      %c0_11 = arith.constant 0 : index
      %c0_12 = arith.constant 0 : index
      %19 = vector.load %arg8[%c0_11, %c0_12] : memref<128x128xf32, #tpu.memory_space<vmem>>, vector<128x128xf32>
      tpu.vector_store %arg8[%c0_11, %c0_12], %18 {strides = array<i32>} : memref<128x128xf32, #tpu.memory_space<vmem>>, vector<128x128xf32>,
    } else {
    }
    return
  }
  func.func @transform_0(%arg0: i32, %arg1: i32) -> (i32, i32) {
    %c0_i32 = arith.constant 0 : i32
    %c0_i32_0 = arith.constant 0 : i32
    %c0_i32_1 = arith.constant 0 : i32
    return %c0_i32, %c0_i32_0 : i32, i32
  }
  func.func @transform_1(%arg0: i32, %arg1: i32) -> (i32, i32) {
    %c0_i32 = arith.constant 0 : i32
    %c0_i32_0 = arith.constant 0 : i32
    %c0_i32_1 = arith.constant 0 : i32
    return %c0_i32, %c0_i32_0 : i32, i32
  }
  func.func @transform_2(%arg0: i32, %arg1: i32) -> (i32, i32) {
    %c0_i32 = arith.constant 0 : i32
    %c0_i32_0 = arith.constant 0 : i32
    %c0_i32_1 = arith.constant 0 : i32
    return %c0_i32, %c0_i32_0 : i32, i32
  }
  func.func @transform_3(%arg0: i32, %arg1: i32) -> (i32, i32) {
    %c0_i32 = arith.constant 0 : i32
    %c0_i32_0 = arith.constant 0 : i32
    %c0_i32_1 = arith.constant 0 : i32
    return %c0_i32, %c0_i32_0 : i32, i32
  }
  func.func @transform_4(%arg0: i32, %arg1: i32) -> (i32, i32) {
    %c0_i32 = arith.constant 0 : i32
    %c0_i32_0 = arith.constant 0 : i32
    %c0_i32_1 = arith.constant 0 : i32
    return %c0_i32, %c0_i32_0 : i32, i32
  }
  func.func @transform_5(%arg0: i32, %arg1: i32) -> (i32, i32) {
    %c0_i32 = arith.constant 0 : i32
    %c0_i32_0 = arith.constant 0 : i32
    return %arg1, %c0_i32 : i32, i32
  }
  func.func @transform_6(%arg0: i32, %arg1: i32) -> (i32, i32) {
    %c0_i32 = arith.constant 0 : i32
    %c0_i32_0 = arith.constant 0 : i32
    return %arg1, %c0_i32 : i32, i32
  }
}

</mosaic_0001>

<bundles_post_ra>
// kernel: tpu_custom_call.1
= control target key start
LH: loop header
LB: loop body
LE: loop exit
PB: predicated region body
PF: predicated region fallthrough
CT: control target
= control target key end

     0   :  { %11 = vsyncpa [#allocation5], 0  ;;  %s1726_s21 = smov 0   ;;  %s1728_s22 = smov 0   ;;  %s1946_s0 = inlined_call_operand.vmem [shape: bf16[128,64], index: 0, kind: input, shape index: {}]   ;;  %s1947_s1 = inlined_call_operand.vmem [shape: bf16[128,64], index: 1, kind: input, shape index: {}]   ;;  %s1948_s2 = inlined_call_operand.vmem [shape: f32[1,128], index: 2, kind: input, shape index: {}]   ;;  %s1949_s3 = inlined_call_operand.vmem [shape: bf16[128,128], index: 3, kind: input, shape index: {}]   ;;  %s1950_s4 = inlined_call_operand.vmem [shape: f32[1,128], index: 4, kind: input, shape index: {}]   ;;  %s1951_s5 = inlined_call_operand.vmem [shape: bf16[128,128], index: 5, kind: input, shape index: {}]   ;;  %s1952_s6 = inlined_call_operand.hbm [shape: f32[128,128], index: 6, kind: output, shape index: {}]  }
   0x1   :  { %s1730_s23 = smov 0  }
   0x2 LB: > { %s1223_s24 = sadd.s32 4294967295, %s1685_s23   ;;  %s29_s25 = sadd.s32 1, %s1681_s22  ;;  %s1685_s23 = sphi %s1730_s23, %s17_s23   ;;  %s1681_s22 = sphi %s1728_s22, %s1955_s22   ;;  %s1677_s21 = sphi %s1726_s21, %s1954_s21  }
   0x3   : > { %p31_p0 = scmp.ge.s32.totalorder %s29_s25, 2  ;;  %p1226_p1 = scmp.ge.s32.totalorder %s1685_s23, 1 }
   0x4   : > { %p226_p2 = scmp.lt.s32.totalorder %s1685_s23, 3 }
   0x5   : > { %s1957_s25 = smov (%p31_p0, %s29_s25), 0 }
   0x6   : > { %p227_p3 = pnand %p1226_p1, %p226_p2 }
   0x7   : > { %p259_p4 = scmp.eq.s32.totalorder (!%p227_p3), %s1677_s21, 0 }
   0x8   : > { %230 = sbr.rel (%p227_p3) target bundleno = 1148 (0x47c), region = 44 }
   0xf   : > { %264 = sbr.rel (!%p259_p4) target bundleno = 308 (0x134), region = 48  ;;  %v1593_v0 = vld [vmem:[%s1947_s1] sm:$0xff] (%p259_p4)   ;;  %vm384_vm0 = vcmask (%p259_p4), 523264   ;;  %v1594_v1 = vld [vmem:[%s1947_s1 + $0x8] sm:$0xff] (%p259_p4)   ;;  %v1595_v3 = vld [vmem:[%s1947_s1 + $0x10] sm:$0xff] (%p259_p4)  }
  0x10   : > { %1543 = vmatprep.subr.msk.bf16.mxu0 (%p259_p4), %vm384_vm0, %v1593_v0  ;;  %1544 = vmatprep.subr.msk.bf16.mxu1 (%p259_p4), %vm384_vm0, %v1593_v0  ;;  %v410_v2 = vsel (%p259_p4), %vm384_vm0, %v1593_v0, 0  ;;  %v413_v4 = vsel (%p259_p4), %vm384_vm0, %v1594_v1, 0  ;;  %v1601_v5 = vld [vmem:[%s1946_s0] sm:$0xff] (%p259_p4)   ;;  %v416_v7 = vsel (%p259_p4), %vm384_vm0, %v1595_v3, 0  ;;  %v1596_v8 = vld [vmem:[%s1947_s1 + $0x18] sm:$0xff] (%p259_p4)   ;;  %v1598_v12 = vld [vmem:[%s1947_s1 + $0x28] sm:$0xff] (%p259_p4)  }
  0x11   : > { %1352 = vmatpush3.bf16.xpose.msra.mxu0 (%p259_p4), %v410_v2  ;;  %1487 = vmatpush3.bf16.xpose.msra.mxu1 (%p259_p4), %v410_v2  ;;  %v1602_v6 = vld [vmem:[%s1946_s0 + $0x20] sm:$0xff] (%p259_p4)   ;;  %v419_v9 = vsel (%p259_p4), %vm384_vm0, %v1596_v8, 0  ;;  %v425_v13 = vsel (%p259_p4), %vm384_vm0, %v1598_v12, 0  ;;  %v1599_v14 = vld [vmem:[%s1947_s1 + $0x30] sm:$0xff] (%p259_p4)   ;;  %v1600_v16 = vld [vmem:[%s1947_s1 + $0x38] sm:$0xff] (%p259_p4)  }
  0x12   : > { %1545 = vmatprep.subr.msk.bf16.mxu0 (%p259_p4), %vm384_vm0, %v1594_v1  ;;  %1546 = vmatprep.subr.msk.bf16.mxu1 (%p259_p4), %vm384_vm0, %v1594_v1  ;;  %v1597_v10 = vld [vmem:[%s1947_s1 + $0x20] sm:$0xff] (%p259_p4)   ;;  %v428_v15 = vsel (%p259_p4), %vm384_vm0, %v1599_v14, 0  ;;  %v431_v17 = vsel (%p259_p4), %vm384_vm0, %v1600_v16, 0  ;;  %v1603_v18 = vld [vmem:[%s1946_s0 + $0x8] sm:$0xff] (%p259_p4)   ;;  %v1605_v20 = vld [vmem:[%s1946_s0 + $0x10] sm:$0xff] (%p259_p4)  }
  0x13   : > { %1367 = vmatprep.mubr.msk.bf16.mxu0 (%p259_p4), %vm384_vm0, %v1601_v5  ;;  %1375 = vmatprep.mubr.msk.bf16.mxu1 (%p259_p4), %vm384_vm0, %v1602_v6  ;;  %v422_v11 = vsel (%p259_p4), %vm384_vm0, %v1597_v10, 0  ;;  %v1604_v19 = vld [vmem:[%s1946_s0 + $0x28] sm:$0xff] (%p259_p4)   ;;  %v1606_v21 = vld [vmem:[%s1946_s0 + $0x30] sm:$0xff] (%p259_p4)   ;;  %v1607_v22 = vld [vmem:[%s1946_s0 + $0x18] sm:$0xff] (%p259_p4)  }
  0x14   : > { %v1608_v23 = vld [vmem:[%s1946_s0 + $0x38] sm:$0xff] (%p259_p4)   ;;  %v1228_v25 = vld [vmem:[%s1948_s2] ss:$0 sm:$0xff] (%p259_p4) }
  0x19   : > { %1354 = vmatpush3.bf16.xpose.msra.mxu0 %v413_v4  ;;  %1488 = vmatpush3.bf16.xpose.msra.mxu1 %v413_v4 }
  0x1a   : > { %1547 = vmatprep.subr.msk.bf16.mxu0 %vm384_vm0, %v1595_v3  ;;  %1548 = vmatprep.subr.msk.bf16.mxu1 %vm384_vm0, %v1595_v3 }
  0x21   : > { %1356 = vmatpush3.bf16.xpose.msra.mxu0 %v416_v7  ;;  %1489 = vmatpush3.bf16.xpose.msra.mxu1 %v416_v7 }
  0x22   : > { %1549 = vmatprep.subr.msk.bf16.mxu0 %vm384_vm0, %v1596_v8  ;;  %1550 = vmatprep.subr.msk.bf16.mxu1 %vm384_vm0, %v1596_v8 }
  0x29   : > { %1358 = vmatpush3.bf16.xpose.msra.mxu0 %v419_v9  ;;  %1490 = vmatpush3.bf16.xpose.msra.mxu1 %v419_v9 }
  0x2a   : > { %1551 = vmatprep.subr.msk.bf16.mxu0 %vm384_vm0, %v1597_v10  ;;  %1552 = vmatprep.subr.msk.bf16.mxu1 %vm384_vm0, %v1597_v10 }
  0x31   : > { %1360 = vmatpush3.bf16.xpose.msra.mxu0 %v422_v11  ;;  %1491 = vmatpush3.bf16.xpose.msra.mxu1 %v422_v11 }
  0x32   : > { %1553 = vmatprep.subr.msk.bf16.mxu0 %vm384_vm0, %v1598_v12  ;;  %1554 = vmatprep.subr.msk.bf16.mxu1 %vm384_vm0, %v1598_v12 }
  0x39   : > { %1362 = vmatpush3.bf16.xpose.msra.mxu0 %v425_v13  ;;  %1492 = vmatpush3.bf16.xpose.msra.mxu1 %v425_v13 }
  0x3a   : > { %1555 = vmatprep.subr.msk.bf16.mxu0 %vm384_vm0, %v1599_v14  ;;  %1556 = vmatprep.subr.msk.bf16.mxu1 %vm384_vm0, %v1599_v14 }
  0x41   : > { %1364 = vmatpush3.bf16.xpose.msra.mxu0 %v428_v15  ;;  %1493 = vmatpush3.bf16.xpose.msra.mxu1 %v428_v15 }
  0x42   : > { %1557 = vmatprep.subr.msk.bf16.mxu0 %vm384_vm0, %v1600_v16  ;;  %1558 = vmatprep.subr.msk.bf16.mxu1 %vm384_vm0, %v1600_v16 }
  0x49   : > { %1366 = vmatpush3.bf16.xpose.msra.mxu0 %v431_v17  ;;  %1494 = vmatpush3.bf16.xpose.msra.mxu1 %v431_v17 }
  0x50   : > { %1368 = vmatmul.mubr.msk.bf16.vlgmr.msra.gmra.mrb[0].mxu0 %vm384_vm0, %v1603_v18  ;;  %1376 = vmatmul.mubr.msk.bf16.vlgmr.msra.gmra.mrb[0].mxu1 %vm384_vm0, %v1604_v19 }
  0x51   : > { %1371 = vmatprep.mubr.msk.bf16.mxu0 %vm384_vm0, %v1605_v20  ;;  %1379 = vmatprep.mubr.msk.bf16.mxu1 %vm384_vm0, %v1606_v21 }
  0x58   : > { %1372 = vmatmul.mubr.msk.bf16.gmra.mrb[4].mxu0 %vm384_vm0, %v1607_v22  ;;  %1380 = vmatmul.mubr.msk.bf16.gmra.mrb[4].mxu1 %vm384_vm0, %v1608_v23 }
 0x123   : > { %v1369_v24 = vpop.f32.mrb[0].mxu0  ;;  %v1377_v26 = vpop.f32.mrb[0].mxu1 }
 0x124   : > { %v467_v27 = vpop.f32.mrb[1].mxu0  ;;  %v499_v28 = vpop.f32.mrb[1].mxu1  ;;  %v476_v31 = vadd.f32 %v1369_v24, %v1228_v25  ;;  %v508_v32 = vadd.f32 %v1377_v26, %v1228_v25 }
 0x125   : > { %v1370_v29 = vpop.f32.mrb[2].mxu0  ;;  %v1378_v30 = vpop.f32.mrb[2].mxu1  ;;  %v468_v37 = vadd.f32 %v1228_v25, %v467_v27  ;;  %v500_v38 = vadd.f32 %v1228_v25, %v499_v28 }
 0x126   : > { %v479_v33 = vadd.f32 %v1370_v29, %v1228_v25  ;;  %v511_v34 = vadd.f32 %v1378_v30, %v1228_v25  ;;  %v470_v35 = vpop.f32.mrb[3].mxu0  ;;  %v502_v36 = vpop.f32.mrb[3].mxu1 }
 0x127   : > { %v471_v39 = vadd.f32 %v1228_v25, %v470_v35  ;;  %v503_v40 = vadd.f32 %v1228_v25, %v502_v36 }
 0x128   : > { %v531_v41 = vpack.c.bf16 %v479_v33, %v476_v31  ;;  %v535_v42 = vpack.c.bf16 %v511_v34, %v508_v32 }
 0x129   : > { %v530_v43 = vpack.c.bf16 %v471_v39, %v468_v37  ;;  %v534_v44 = vpack.c.bf16 %v503_v40, %v500_v38 }
 0x12a   : > { %539 = vst [vmem:[#allocation2 + $0x8] sm:$0xff] %v531_v41  ;;  %543 = vst [vmem:[#allocation2 + $0x28] sm:$0xff] %v535_v42 }
 0x12b   : > { %538 = vst [vmem:[#allocation2] sm:$0xff] %v530_v43  ;;  %542 = vst [vmem:[#allocation2 + $0x20] sm:$0xff] %v534_v44  ;;  %v1373_v45 = vpop.f32.mrb[4].mxu0  ;;  %v1381_v46 = vpop.f32.mrb[4].mxu1 }
 0x12c   : > { %v483_v47 = vpop.f32.mrb[5].mxu0  ;;  %v515_v48 = vpop.f32.mrb[5].mxu1  ;;  %v492_v51 = vadd.f32 %v1373_v45, %v1228_v25  ;;  %v524_v52 = vadd.f32 %v1381_v46, %v1228_v25 }
 0x12d   : > { %v1374_v49 = vpop.f32.mrb[6].mxu0  ;;  %v1382_v50 = vpop.f32.mrb[6].mxu1  ;;  %v484_v57 = vadd.f32 %v1228_v25, %v483_v47  ;;  %v516_v58 = vadd.f32 %v1228_v25, %v515_v48 }
 0x12e   : > { %v495_v53 = vadd.f32 %v1374_v49, %v1228_v25  ;;  %v527_v54 = vadd.f32 %v1382_v50, %v1228_v25  ;;  %v486_v55 = vpop.f32.mrb[7].mxu0  ;;  %v518_v56 = vpop.f32.mrb[7].mxu1 }
 0x12f   : > { %v487_v59 = vadd.f32 %v1228_v25, %v486_v55  ;;  %v519_v60 = vadd.f32 %v1228_v25, %v518_v56 }
 0x130   : > { %v533_v61 = vpack.c.bf16 %v495_v53, %v492_v51  ;;  %v537_v62 = vpack.c.bf16 %v527_v54, %v524_v52 }
 0x131   : > { %v532_v63 = vpack.c.bf16 %v487_v59, %v484_v57  ;;  %v536_v0 = vpack.c.bf16 %v519_v60, %v516_v58 }
 0x132   : > { %541 = vst [vmem:[#allocation2 + $0x18] sm:$0xff] %v533_v61  ;;  %545 = vst [vmem:[#allocation2 + $0x38] sm:$0xff] %v537_v62 }
 0x133   : > { %540 = vst [vmem:[#allocation2 + $0x10] sm:$0xff] %v532_v63  ;;  %544 = vst [vmem:[#allocation2 + $0x30] sm:$0xff] %v536_v0 }
 0x134 PF: > { %p546_p5 = scmp.eq.s32.totalorder %s1677_s21, 1 }
 0x135   : > { %v1609_v1 = vld [vmem:[%s1949_s3] sm:$0xff] (%p546_p5)   ;;  %v1610_v2 = vld [vmem:[%s1949_s3 + $0x8] sm:$0xff] (%p546_p5)   ;;  %v1611_v3 = vld [vmem:[%s1949_s3 + $0x10] sm:$0xff] (%p546_p5)  }
 0x136   : > { %550 = sbr.rel (!%p546_p5) target bundleno = 602 (0x25a), region = 52  ;;  %1383 = vmatprep.subr.bf16.mxu0 (%p546_p5), %v1609_v1  ;;  %1495 = vmatprep.subr.bf16.mxu1 (%p546_p5), %v1609_v1  ;;  %v551_v4 = vld [vmem:[#allocation3] sm:$0xff] (%p546_p5)  ;;  %v1612_v6 = vld [vmem:[%s1949_s3 + $0x18] sm:$0xff] (%p546_p5)   ;;  %v1614_v8 = vld [vmem:[%s1949_s3 + $0x28] sm:$0xff] (%p546_p5)  }
 0x137   : > { %1384 = vmatpush3.bf16.xpose.msra.mxu0 (%p546_p5), %v1609_v1  ;;  %1503 = vmatpush3.bf16.xpose.msra.mxu1 (%p546_p5), %v1609_v1  ;;  %v555_v5 = vld [vmem:[#allocation3 + $0x20] sm:$0xff] (%p546_p5)  ;;  %v1615_v9 = vld [vmem:[%s1949_s3 + $0x30] sm:$0xff] (%p546_p5)   ;;  %v1616_v10 = vld [vmem:[%s1949_s3 + $0x38] sm:$0xff] (%p546_p5)  }
 0x138   : > { %1385 = vmatprep.subr.bf16.mxu0 (%p546_p5), %v1610_v2  ;;  %1496 = vmatprep.subr.bf16.mxu1 (%p546_p5), %v1610_v2  ;;  %v1613_v7 = vld [vmem:[%s1949_s3 + $0x20] sm:$0xff] (%p546_p5)   ;;  %v552_v11 = vld [vmem:[#allocation3 + $0x8] sm:$0xff] (%p546_p5)  ;;  %v553_v13 = vld [vmem:[#allocation3 + $0x10] sm:$0xff] (%p546_p5) }
 0x139   : > { %1399 = vmatprep.mubr.bf16.mxu0 (%p546_p5), %v551_v4  ;;  %1407 = vmatprep.mubr.bf16.mxu1 (%p546_p5), %v555_v5  ;;  %v556_v12 = vld [vmem:[#allocation3 + $0x28] sm:$0xff] (%p546_p5)  ;;  %v557_v14 = vld [vmem:[#allocation3 + $0x30] sm:$0xff] (%p546_p5)  ;;  %v554_v15 = vld [vmem:[#allocation3 + $0x18] sm:$0xff] (%p546_p5) }
 0x13a   : > { %v558_v16 = vld [vmem:[#allocation3 + $0x38] sm:$0xff] (%p546_p5)  ;;  %v1254_v18 = vld [vmem:[%s1950_s4] ss:$0 sm:$0xff] (%p546_p5) }
 0x13f   : > { %1386 = vmatpush3.bf16.xpose.msra.mxu0 %v1610_v2  ;;  %1504 = vmatpush3.bf16.xpose.msra.mxu1 %v1610_v2 }
 0x140   : > { %1387 = vmatprep.subr.bf16.mxu0 %v1611_v3  ;;  %1497 = vmatprep.subr.bf16.mxu1 %v1611_v3 }
 0x147   : > { %1388 = vmatpush3.bf16.xpose.msra.mxu0 %v1611_v3  ;;  %1505 = vmatpush3.bf16.xpose.msra.mxu1 %v1611_v3 }
 0x148   : > { %1389 = vmatprep.subr.bf16.mxu0 %v1612_v6  ;;  %1498 = vmatprep.subr.bf16.mxu1 %v1612_v6 }
 0x14f   : > { %1390 = vmatpush3.bf16.xpose.msra.mxu0 %v1612_v6  ;;  %1506 = vmatpush3.bf16.xpose.msra.mxu1 %v1612_v6 }
 0x150   : > { %1391 = vmatprep.subr.bf16.mxu0 %v1613_v7  ;;  %1499 = vmatprep.subr.bf16.mxu1 %v1613_v7 }
 0x157   : > { %1392 = vmatpush3.bf16.xpose.msra.mxu0 %v1613_v7  ;;  %1507 = vmatpush3.bf16.xpose.msra.mxu1 %v1613_v7 }
 0x158   : > { %1393 = vmatprep.subr.bf16.mxu0 %v1614_v8  ;;  %1500 = vmatprep.subr.bf16.mxu1 %v1614_v8 }
 0x15f   : > { %1394 = vmatpush3.bf16.xpose.msra.mxu0 %v1614_v8  ;;  %1508 = vmatpush3.bf16.xpose.msra.mxu1 %v1614_v8 }
 0x160   : > { %1395 = vmatprep.subr.bf16.mxu0 %v1615_v9  ;;  %1501 = vmatprep.subr.bf16.mxu1 %v1615_v9 }
 0x167   : > { %1396 = vmatpush3.bf16.xpose.msra.mxu0 %v1615_v9  ;;  %1509 = vmatpush3.bf16.xpose.msra.mxu1 %v1615_v9 }
 0x168   : > { %1397 = vmatprep.subr.bf16.mxu0 %v1616_v10  ;;  %1502 = vmatprep.subr.bf16.mxu1 %v1616_v10 }
 0x16f   : > { %1398 = vmatpush3.bf16.xpose.msra.mxu0 %v1616_v10  ;;  %1510 = vmatpush3.bf16.xpose.msra.mxu1 %v1616_v10 }
 0x176   : > { %1400 = vmatmul.mubr.bf16.vlgmr.msra.gmra.mrb[0].mxu0 %v552_v11  ;;  %1408 = vmatmul.mubr.bf16.vlgmr.msra.gmra.mrb[0].mxu1 %v556_v12 }
 0x177   : > { %1403 = vmatprep.mubr.bf16.mxu0 %v553_v13  ;;  %1411 = vmatprep.mubr.bf16.mxu1 %v557_v14 }
 0x17e   : > { %1404 = vmatmul.mubr.bf16.gmra.mrb[4].mxu0 %v554_v15  ;;  %1412 = vmatmul.mubr.bf16.gmra.mrb[4].mxu1 %v558_v16 }
 0x249   : > { %v1401_v17 = vpop.f32.mrb[0].mxu0  ;;  %v1409_v19 = vpop.f32.mrb[0].mxu1 }
 0x24a   : > { %v664_v20 = vpop.f32.mrb[1].mxu0  ;;  %v696_v21 = vpop.f32.mrb[1].mxu1  ;;  %v673_v24 = vadd.f32 %v1401_v17, %v1254_v18  ;;  %v705_v25 = vadd.f32 %v1409_v19, %v1254_v18 }
 0x24b   : > { %v1402_v22 = vpop.f32.mrb[2].mxu0  ;;  %v1410_v23 = vpop.f32.mrb[2].mxu1  ;;  %v665_v30 = vadd.f32 %v1254_v18, %v664_v20  ;;  %v697_v31 = vadd.f32 %v1254_v18, %v696_v21 }
 0x24c   : > { %v676_v26 = vadd.f32 %v1402_v22, %v1254_v18  ;;  %v708_v27 = vadd.f32 %v1410_v23, %v1254_v18  ;;  %v667_v28 = vpop.f32.mrb[3].mxu0  ;;  %v699_v29 = vpop.f32.mrb[3].mxu1 }
 0x24d   : > { %v668_v32 = vadd.f32 %v1254_v18, %v667_v28  ;;  %v700_v33 = vadd.f32 %v1254_v18, %v699_v29 }
 0x24e   : > { %v728_v34 = vpack.c.bf16 %v676_v26, %v673_v24  ;;  %v732_v35 = vpack.c.bf16 %v708_v27, %v705_v25 }
 0x24f   : > { %v727_v36 = vpack.c.bf16 %v668_v32, %v665_v30  ;;  %v731_v37 = vpack.c.bf16 %v700_v33, %v697_v31 }
 0x250   : > { %736 = vst [vmem:[#allocation2 + $0x8] sm:$0xff] %v728_v34  ;;  %740 = vst [vmem:[#allocation2 + $0x28] sm:$0xff] %v732_v35 }
 0x251   : > { %735 = vst [vmem:[#allocation2] sm:$0xff] %v727_v36  ;;  %739 = vst [vmem:[#allocation2 + $0x20] sm:$0xff] %v731_v37  ;;  %v1405_v38 = vpop.f32.mrb[4].mxu0  ;;  %v1413_v39 = vpop.f32.mrb[4].mxu1 }
 0x252   : > { %v680_v40 = vpop.f32.mrb[5].mxu0  ;;  %v712_v41 = vpop.f32.mrb[5].mxu1  ;;  %v689_v44 = vadd.f32 %v1405_v38, %v1254_v18  ;;  %v721_v45 = vadd.f32 %v1413_v39, %v1254_v18 }
 0x253   : > { %v1406_v42 = vpop.f32.mrb[6].mxu0  ;;  %v1414_v43 = vpop.f32.mrb[6].mxu1  ;;  %v681_v50 = vadd.f32 %v1254_v18, %v680_v40  ;;  %v713_v51 = vadd.f32 %v1254_v18, %v712_v41 }
 0x254   : > { %v692_v46 = vadd.f32 %v1406_v42, %v1254_v18  ;;  %v724_v47 = vadd.f32 %v1414_v43, %v1254_v18  ;;  %v683_v48 = vpop.f32.mrb[7].mxu0  ;;  %v715_v49 = vpop.f32.mrb[7].mxu1 }
 0x255   : > { %v684_v52 = vadd.f32 %v1254_v18, %v683_v48  ;;  %v716_v53 = vadd.f32 %v1254_v18, %v715_v49 }
 0x256   : > { %v730_v54 = vpack.c.bf16 %v692_v46, %v689_v44  ;;  %v734_v55 = vpack.c.bf16 %v724_v47, %v721_v45 }
 0x257   : > { %v729_v56 = vpack.c.bf16 %v684_v52, %v681_v50  ;;  %v733_v57 = vpack.c.bf16 %v716_v53, %v713_v51 }
 0x258   : > { %738 = vst [vmem:[#allocation2 + $0x18] sm:$0xff] %v730_v54  ;;  %742 = vst [vmem:[#allocation2 + $0x38] sm:$0xff] %v734_v55 }
 0x259   : > { %737 = vst [vmem:[#allocation2 + $0x10] sm:$0xff] %v729_v56  ;;  %741 = vst [vmem:[#allocation2 + $0x30] sm:$0xff] %v733_v57 }
 0x25a PF: > { %p1263_p6 = scmp.ne.s32.totalorder %s1677_s21, 0 }
 0x25b   : > { %v762_v58 = vld [vmem:[#allocation2] sm:$0xff] (!%p1263_p6)  ;;  %v763_v59 = vld [vmem:[#allocation2 + $0x8] sm:$0xff] (!%p1263_p6)  ;;  %v1621_v6 = vld [vmem:[%s1951_s5 + $0x10] sm:$0xff] (!%p1263_p6)   ;;  %v1687_v10 = vmov (!%p1263_p6), 0.0  }
 0x25c   : > { %745 = sbr.rel (%p1263_p6) target bundleno = 864 (0x360), region = 56  ;;  %1415 = vmatprep.subr.bf16.mxu0 (!%p1263_p6), %v762_v58  ;;  %1511 = vmatprep.subr.bf16.mxu1 (!%p1263_p6), %v762_v58  ;;  %v1617_v61 = vld [vmem:[%s1951_s5] sm:$0xff] (!%p1263_p6)   ;;  %v767_v1 = vld [vmem:[#allocation2 + $0x28] sm:$0xff] (!%p1263_p6)  ;;  %v1622_v7 = vld [vmem:[%s1951_s5 + $0x30] sm:$0xff] (!%p1263_p6)   ;;  %952 = vst [vmem:[#allocation4] sm:$0xff] (!%p1263_p6), %v1687_v10 }
 0x25d   : > { %1416 = vmatpush3.bf16.msra.mxu0 (!%p1263_p6), %v762_v58  ;;  %1519 = vmatpush3.bf16.msra.mxu1 (!%p1263_p6), %v762_v58  ;;  %v1618_v62 = vld [vmem:[%s1951_s5 + $0x20] sm:$0xff] (!%p1263_p6)   ;;  %v1619_v4 = vld [vmem:[%s1951_s5 + $0x8] sm:$0xff] (!%p1263_p6)   ;;  %v1623_v8 = vld [vmem:[%s1951_s5 + $0x18] sm:$0xff] (!%p1263_p6)   ;;  %953 = vst [vmem:[#allocation4 + $0x8] sm:$0xff] (!%p1263_p6), %v1687_v10 }
 0x25e   : > { %1417 = vmatprep.subr.bf16.mxu0 (!%p1263_p6), %v763_v59  ;;  %1512 = vmatprep.subr.bf16.mxu1 (!%p1263_p6), %v763_v59  ;;  %v766_v0 = vld [vmem:[#allocation2 + $0x20] sm:$0xff] (!%p1263_p6)  ;;  %v1620_v5 = vld [vmem:[%s1951_s5 + $0x28] sm:$0xff] (!%p1263_p6)   ;;  %v1624_v9 = vld [vmem:[%s1951_s5 + $0x38] sm:$0xff] (!%p1263_p6)   ;;  %954 = vst [vmem:[#allocation4 + $0x10] sm:$0xff] (!%p1263_p6), %v1687_v10 }
 0x25f   : > { %1431 = vmatprep.mubr.bf16.mxu0 (!%p1263_p6), %v1617_v61  ;;  %v765_v63 = vld [vmem:[#allocation2 + $0x18] sm:$0xff] (!%p1263_p6)  ;;  %1439 = vmatprep.mubr.bf16.mxu1 (!%p1263_p6), %v1618_v62  ;;  %955 = vst [vmem:[#allocation4 + $0x18] sm:$0xff] (!%p1263_p6), %v1687_v10  ;;  %956 = vst [vmem:[#allocation4 + $0x20] sm:$0xff] (!%p1263_p6), %v1687_v10 }
 0x260   : > { %v764_v60 = vld [vmem:[#allocation2 + $0x10] sm:$0xff] (!%p1263_p6)  ;;  %v769_v3 = vld [vmem:[#allocation2 + $0x38] sm:$0xff] (!%p1263_p6)  ;;  %957 = vst [vmem:[#allocation4 + $0x28] sm:$0xff] (!%p1263_p6), %v1687_v10  ;;  %958 = vst [vmem:[#allocation4 + $0x30] sm:$0xff] (!%p1263_p6), %v1687_v10 }
 0x261   : > { %1418 = vmatpush3.bf16.msra.mxu0 (!%p1263_p6), %v763_v59  ;;  %1520 = vmatpush3.bf16.msra.mxu1 (!%p1263_p6), %v763_v59  ;;  %v768_v2 = vld [vmem:[#allocation2 + $0x30] sm:$0xff] (!%p1263_p6)  ;;  %959 = vst [vmem:[#allocation4 + $0x38] sm:$0xff] (!%p1263_p6), %v1687_v10  ;;  %960 = vst [vmem:[#allocation4 + $0x40] sm:$0xff] (!%p1263_p6), %v1687_v10 }
 0x262   : > { %1419 = vmatprep.subr.bf16.mxu0 (!%p1263_p6), %v764_v60  ;;  %1513 = vmatprep.subr.bf16.mxu1 (!%p1263_p6), %v764_v60  ;;  %961 = vst [vmem:[#allocation4 + $0x48] sm:$0xff] (!%p1263_p6), %v1687_v10  ;;  %962 = vst [vmem:[#allocation4 + $0x50] sm:$0xff] (!%p1263_p6), %v1687_v10 }
 0x263   : > { %963 = vst [vmem:[#allocation4 + $0x58] sm:$0xff] %v1687_v10  ;;  %964 = vst [vmem:[#allocation4 + $0x60] sm:$0xff] %v1687_v10 }
 0x264   : > { %965 = vst [vmem:[#allocation4 + $0x68] sm:$0xff] %v1687_v10  ;;  %966 = vst [vmem:[#allocation4 + $0x70] sm:$0xff] %v1687_v10 }
 0x265   : > { %1420 = vmatpush3.bf16.msra.mxu0 %v764_v60  ;;  %1521 = vmatpush3.bf16.msra.mxu1 %v764_v60  ;;  %967 = vst [vmem:[#allocation4 + $0x78] sm:$0xff] %v1687_v10 }
 0x266   : > { %1421 = vmatprep.subr.bf16.mxu0 %v765_v63  ;;  %1514 = vmatprep.subr.bf16.mxu1 %v765_v63 }
 0x269   : > { %1422 = vmatpush3.bf16.msra.mxu0 %v765_v63  ;;  %1522 = vmatpush3.bf16.msra.mxu1 %v765_v63 }
 0x26a   : > { %1423 = vmatprep.subr.bf16.mxu0 %v766_v0  ;;  %1515 = vmatprep.subr.bf16.mxu1 %v766_v0 }
 0x26d   : > { %1424 = vmatpush3.bf16.msra.mxu0 %v766_v0  ;;  %1523 = vmatpush3.bf16.msra.mxu1 %v766_v0 }
 0x26e   : > { %1425 = vmatprep.subr.bf16.mxu0 %v767_v1  ;;  %1516 = vmatprep.subr.bf16.mxu1 %v767_v1 }
 0x271   : > { %1426 = vmatpush3.bf16.msra.mxu0 %v767_v1  ;;  %1524 = vmatpush3.bf16.msra.mxu1 %v767_v1 }
 0x272   : > { %1427 = vmatprep.subr.bf16.mxu0 %v768_v2  ;;  %1517 = vmatprep.subr.bf16.mxu1 %v768_v2 }
 0x275   : > { %1428 = vmatpush3.bf16.msra.mxu0 %v768_v2  ;;  %1525 = vmatpush3.bf16.msra.mxu1 %v768_v2 }
 0x276   : > { %1429 = vmatprep.subr.bf16.mxu0 %v769_v3  ;;  %1518 = vmatprep.subr.bf16.mxu1 %v769_v3 }
 0x279   : > { %1430 = vmatpush3.bf16.msra.mxu0 %v769_v3  ;;  %1526 = vmatpush3.bf16.msra.mxu1 %v769_v3 }
 0x27c   : > { %1432 = vmatmul.mubr.bf16.vlgmr.msra.gmra.mrb[0].mxu0 %v1619_v4  ;;  %1440 = vmatmul.mubr.bf16.vlgmr.msra.gmra.mrb[0].mxu1 %v1620_v5 }
 0x27d   : > { %1435 = vmatprep.mubr.bf16.mxu0 %v1621_v6  ;;  %1443 = vmatprep.mubr.bf16.mxu1 %v1622_v7 }
 0x284   : > { %1436 = vmatmul.mubr.bf16.gmra.mrb[4].mxu0 %v1623_v8  ;;  %1444 = vmatmul.mubr.bf16.gmra.mrb[4].mxu1 %v1624_v9 }
 0x34f   : > { %v1433_v11 = vpop.f32.mrb[0].mxu0  ;;  %v1441_v12 = vpop.f32.mrb[0].mxu1 }
 0x350   : > { %v852_v13 = vpop.f32.mrb[1].mxu0  ;;  %v884_v14 = vpop.f32.mrb[1].mxu1  ;;  %v918_v17 = vmax.f32 %v1433_v11, 0.0  ;;  %v926_v18 = vmax.f32 %v1441_v12, 0.0 }
 0x351   : > { %v1434_v15 = vpop.f32.mrb[2].mxu0  ;;  %v1442_v16 = vpop.f32.mrb[2].mxu1  ;;  %v916_v23 = vmax.f32 %v852_v13, 0.0  ;;  %v924_v24 = vmax.f32 %v884_v14, 0.0 }
 0x352   : > { %v919_v19 = vmax.f32 %v1434_v15, 0.0  ;;  %v927_v20 = vmax.f32 %v1442_v16, 0.0  ;;  %v855_v21 = vpop.f32.mrb[3].mxu0  ;;  %v887_v22 = vpop.f32.mrb[3].mxu1 }
 0x353   : > { %v917_v25 = vmax.f32 %v855_v21, 0.0  ;;  %v925_v26 = vmax.f32 %v887_v22, 0.0 }
 0x354   : > { %v933_v27 = vpack.c.bf16 %v919_v19, %v918_v17  ;;  %v937_v28 = vpack.c.bf16 %v927_v20, %v926_v18 }
 0x355   : > { %v932_v29 = vpack.c.bf16 %v917_v25, %v916_v23  ;;  %v936_v30 = vpack.c.bf16 %v925_v26, %v924_v24 }
 0x356   : > { %945 = vst [vmem:[#allocation3 + $0x8] sm:$0xff] %v933_v27  ;;  %949 = vst [vmem:[#allocation3 + $0x28] sm:$0xff] %v937_v28 }
 0x357   : > { %944 = vst [vmem:[#allocation3] sm:$0xff] %v932_v29  ;;  %948 = vst [vmem:[#allocation3 + $0x20] sm:$0xff] %v936_v30  ;;  %v1437_v31 = vpop.f32.mrb[4].mxu0  ;;  %v1445_v32 = vpop.f32.mrb[4].mxu1 }
 0x358   : > { %v868_v33 = vpop.f32.mrb[5].mxu0  ;;  %v900_v34 = vpop.f32.mrb[5].mxu1  ;;  %v922_v37 = vmax.f32 %v1437_v31, 0.0  ;;  %v930_v38 = vmax.f32 %v1445_v32, 0.0 }
 0x359   : > { %v1438_v35 = vpop.f32.mrb[6].mxu0  ;;  %v1446_v36 = vpop.f32.mrb[6].mxu1  ;;  %v920_v43 = vmax.f32 %v868_v33, 0.0  ;;  %v928_v44 = vmax.f32 %v900_v34, 0.0 }
 0x35a   : > { %v923_v39 = vmax.f32 %v1438_v35, 0.0  ;;  %v931_v40 = vmax.f32 %v1446_v36, 0.0  ;;  %v871_v41 = vpop.f32.mrb[7].mxu0  ;;  %v903_v42 = vpop.f32.mrb[7].mxu1 }
 0x35b   : > { %v921_v45 = vmax.f32 %v871_v41, 0.0  ;;  %v929_v46 = vmax.f32 %v903_v42, 0.0 }
 0x35c   : > { %v935_v47 = vpack.c.bf16 %v923_v39, %v922_v37  ;;  %v939_v48 = vpack.c.bf16 %v931_v40, %v930_v38 }
 0x35d   : > { %v934_v49 = vpack.c.bf16 %v921_v45, %v920_v43  ;;  %v938_v50 = vpack.c.bf16 %v929_v46, %v928_v44 }
 0x35e   : > { %947 = vst [vmem:[#allocation3 + $0x18] sm:$0xff] %v935_v47  ;;  %951 = vst [vmem:[#allocation3 + $0x38] sm:$0xff] %v939_v48 }
 0x35f   : > { %946 = vst [vmem:[#allocation3 + $0x10] sm:$0xff] %v934_v49  ;;  %950 = vst [vmem:[#allocation3 + $0x30] sm:$0xff] %v938_v50 }
 0x360 PF: > { %p1272_p7 = scmp.ne.s32.totalorder %s1677_s21, 1 }
 0x361   : > { %v987_v51 = vld [vmem:[#allocation2] sm:$0xff] (!%p1272_p7)  ;;  %v988_v52 = vld [vmem:[#allocation2 + $0x8] sm:$0xff] (!%p1272_p7)  ;;  %v989_v53 = vld [vmem:[#allocation2 + $0x10] sm:$0xff] (!%p1272_p7) }
 0x362   : > { %970 = sbr.rel (%p1272_p7) target bundleno = 1122 (0x462), region = 60  ;;  %1447 = vmatprep.subr.bf16.mxu0 (!%p1272_p7), %v987_v51  ;;  %1527 = vmatprep.subr.bf16.mxu1 (!%p1272_p7), %v987_v51  ;;  %v1625_v54 = vld [vmem:[%s1951_s5] sm:$0xff] (!%p1272_p7)   ;;  %v990_v56 = vld [vmem:[#allocation2 + $0x18] sm:$0xff] (!%p1272_p7)  ;;  %v992_v58 = vld [vmem:[#allocation2 + $0x28] sm:$0xff] (!%p1272_p7) }
 0x363   : > { %1448 = vmatpush3.bf16.msra.mxu0 (!%p1272_p7), %v987_v51  ;;  %1535 = vmatpush3.bf16.msra.mxu1 (!%p1272_p7), %v987_v51  ;;  %v1626_v55 = vld [vmem:[%s1951_s5 + $0x20] sm:$0xff] (!%p1272_p7)   ;;  %v993_v59 = vld [vmem:[#allocation2 + $0x30] sm:$0xff] (!%p1272_p7)  ;;  %v994_v60 = vld [vmem:[#allocation2 + $0x38] sm:$0xff] (!%p1272_p7) }
 0x364   : > { %1449 = vmatprep.subr.bf16.mxu0 (!%p1272_p7), %v988_v52  ;;  %1528 = vmatprep.subr.bf16.mxu1 (!%p1272_p7), %v988_v52  ;;  %v991_v57 = vld [vmem:[#allocation2 + $0x20] sm:$0xff] (!%p1272_p7)  ;;  %v1627_v61 = vld [vmem:[%s1951_s5 + $0x8] sm:$0xff] (!%p1272_p7)   ;;  %v1629_v63 = vld [vmem:[%s1951_s5 + $0x10] sm:$0xff] (!%p1272_p7)  }
 0x365   : > { %1463 = vmatprep.mubr.bf16.mxu0 (!%p1272_p7), %v1625_v54  ;;  %1471 = vmatprep.mubr.bf16.mxu1 (!%p1272_p7), %v1626_v55  ;;  %v1628_v62 = vld [vmem:[%s1951_s5 + $0x28] sm:$0xff] (!%p1272_p7)   ;;  %v1630_v0 = vld [vmem:[%s1951_s5 + $0x30] sm:$0xff] (!%p1272_p7)   ;;  %v1631_v1 = vld [vmem:[%s1951_s5 + $0x18] sm:$0xff] (!%p1272_p7)  }
 0x366   : > { %v1632_v2 = vld [vmem:[%s1951_s5 + $0x38] sm:$0xff] (!%p1272_p7)  }
 0x367   : > { %1450 = vmatpush3.bf16.msra.mxu0 (!%p1272_p7), %v988_v52  ;;  %1536 = vmatpush3.bf16.msra.mxu1 (!%p1272_p7), %v988_v52 }
 0x368   : > { %1451 = vmatprep.subr.bf16.mxu0 (!%p1272_p7), %v989_v53  ;;  %1529 = vmatprep.subr.bf16.mxu1 (!%p1272_p7), %v989_v53 }
 0x36b   : > { %1452 = vmatpush3.bf16.msra.mxu0 %v989_v53  ;;  %1537 = vmatpush3.bf16.msra.mxu1 %v989_v53 }
 0x36c   : > { %1453 = vmatprep.subr.bf16.mxu0 %v990_v56  ;;  %1530 = vmatprep.subr.bf16.mxu1 %v990_v56 }
 0x36f   : > { %1454 = vmatpush3.bf16.msra.mxu0 %v990_v56  ;;  %1538 = vmatpush3.bf16.msra.mxu1 %v990_v56 }
 0x370   : > { %1455 = vmatprep.subr.bf16.mxu0 %v991_v57  ;;  %1531 = vmatprep.subr.bf16.mxu1 %v991_v57 }
 0x373   : > { %1456 = vmatpush3.bf16.msra.mxu0 %v991_v57  ;;  %1539 = vmatpush3.bf16.msra.mxu1 %v991_v57 }
 0x374   : > { %1457 = vmatprep.subr.bf16.mxu0 %v992_v58  ;;  %1532 = vmatprep.subr.bf16.mxu1 %v992_v58 }
 0x377   : > { %1458 = vmatpush3.bf16.msra.mxu0 %v992_v58  ;;  %1540 = vmatpush3.bf16.msra.mxu1 %v992_v58 }
 0x378   : > { %1459 = vmatprep.subr.bf16.mxu0 %v993_v59  ;;  %1533 = vmatprep.subr.bf16.mxu1 %v993_v59 }
 0x37b   : > { %1460 = vmatpush3.bf16.msra.mxu0 %v993_v59  ;;  %1541 = vmatpush3.bf16.msra.mxu1 %v993_v59 }
 0x37c   : > { %1461 = vmatprep.subr.bf16.mxu0 %v994_v60  ;;  %1534 = vmatprep.subr.bf16.mxu1 %v994_v60 }
 0x37f   : > { %1462 = vmatpush3.bf16.msra.mxu0 %v994_v60  ;;  %1542 = vmatpush3.bf16.msra.mxu1 %v994_v60 }
 0x382   : > { %1464 = vmatmul.mubr.bf16.vlgmr.msra.gmra.mrb[0].mxu0 %v1627_v61  ;;  %1472 = vmatmul.mubr.bf16.vlgmr.msra.gmra.mrb[0].mxu1 %v1628_v62 }
 0x383   : > { %1467 = vmatprep.mubr.bf16.mxu0 %v1629_v63  ;;  %1475 = vmatprep.mubr.bf16.mxu1 %v1630_v0 }
 0x38a   : > { %1468 = vmatmul.mubr.bf16.gmra.mrb[4].mxu0 %v1631_v1  ;;  %1476 = vmatmul.mubr.bf16.gmra.mrb[4].mxu1 %v1632_v2 }
 0x455   : > { %v1465_v3 = vpop.f32.mrb[0].mxu0  ;;  %v1473_v4 = vpop.f32.mrb[0].mxu1 }
 0x456   : > { %1142 = vst [vmem:[#allocation4 + $0x10] sm:$0xff] %v1465_v3  ;;  %1150 = vst [vmem:[#allocation4 + $0x50] sm:$0xff] %v1473_v4  ;;  %v1077_v5 = vpop.f32.mrb[1].mxu0  ;;  %v1109_v6 = vpop.f32.mrb[1].mxu1 }
 0x457   : > { %1140 = vst [vmem:[#allocation4] sm:$0xff] %v1077_v5  ;;  %1148 = vst [vmem:[#allocation4 + $0x40] sm:$0xff] %v1109_v6  ;;  %v1466_v7 = vpop.f32.mrb[2].mxu0  ;;  %v1474_v8 = vpop.f32.mrb[2].mxu1 }
 0x458   : > { %1143 = vst [vmem:[#allocation4 + $0x18] sm:$0xff] %v1466_v7  ;;  %1151 = vst [vmem:[#allocation4 + $0x58] sm:$0xff] %v1474_v8  ;;  %v1080_v9 = vpop.f32.mrb[3].mxu0  ;;  %v1112_v10 = vpop.f32.mrb[3].mxu1 }
 0x459   : > { %1141 = vst [vmem:[#allocation4 + $0x8] sm:$0xff] %v1080_v9  ;;  %1149 = vst [vmem:[#allocation4 + $0x48] sm:$0xff] %v1112_v10 }
 0x45d   : > { %v1469_v11 = vpop.f32.mrb[4].mxu0  ;;  %v1477_v12 = vpop.f32.mrb[4].mxu1 }
 0x45e   : > { %1146 = vst [vmem:[#allocation4 + $0x30] sm:$0xff] %v1469_v11  ;;  %1154 = vst [vmem:[#allocation4 + $0x70] sm:$0xff] %v1477_v12  ;;  %v1093_v13 = vpop.f32.mrb[5].mxu0  ;;  %v1125_v14 = vpop.f32.mrb[5].mxu1 }
 0x45f   : > { %1144 = vst [vmem:[#allocation4 + $0x20] sm:$0xff] %v1093_v13  ;;  %1152 = vst [vmem:[#allocation4 + $0x60] sm:$0xff] %v1125_v14  ;;  %v1470_v15 = vpop.f32.mrb[6].mxu0  ;;  %v1478_v16 = vpop.f32.mrb[6].mxu1 }
 0x460   : > { %1147 = vst [vmem:[#allocation4 + $0x38] sm:$0xff] %v1470_v15  ;;  %1155 = vst [vmem:[#allocation4 + $0x78] sm:$0xff] %v1478_v16  ;;  %v1096_v17 = vpop.f32.mrb[7].mxu0  ;;  %v1128_v18 = vpop.f32.mrb[7].mxu1 }
 0x461   : > { %1145 = vst [vmem:[#allocation4 + $0x28] sm:$0xff] %v1096_v17  ;;  %1153 = vst [vmem:[#allocation4 + $0x68] sm:$0xff] %v1128_v18 }
 0x462 PF: > { %p1911_p8 = scmp.eq.s32.totalorder %s1223_s24, 1  ;;  %s1688_s10 = smov [#allocation4]  }
 0x463   : > { %s1165_s11 = sshll.u32 %s1688_s10, 4  ;;  %s1166_s11 = int_to_ptr.vmem [resolvable:$true] %s1165_s11 }
 0x464   : > { %s1633_s12 = scalar_lea.vmem %s1166_s11, 2048  ;;  %p1640_p12 = scmp.lt.s32.totalorder %s1166_s11, %s1166_s11 }
 0x465   : > { %p1634_p9 = scmp.ne.s32.totalorder %s1166_s11, %s1633_s12  ;;  %p1641_p13 = scmp.lt.s32.totalorder %s1633_s12, %s1633_s12 }
 0x467   : > { %p1635_p10 = pnand %p1634_p9, %p1911_p8  ;;  %p1642_p0 = por %p1641_p13, %p1640_p12 }
 0x469   : > { %p1636_p11 = pneg %p1635_p10 }
 0x46b   : > { %p1643_p1 = pnand %p1642_p0, %p1636_p11 }
 0x46d   : > { %1646 = shalt.err (!%p1643_p1)
}
 0x46e   : > { %s1647_s24 = scalar_lea.hbm %s1952_s6, 2048 }
 0x46f   : > { %p1648_p2 = scmp.ne.s32.totalorder %s1952_s6, %s1647_s24  ;;  %p1653_p5 = scmp.lt.u32.totalorder %s1647_s24, %s1952_s6 }
 0x471   : > { %p1649_p3 = pnand %p1648_p2, %p1911_p8 }
 0x473   : > { %p1650_p4 = pneg %p1649_p3 }
 0x475   : > { %p1655_p6 = pnand %p1653_p5, %p1650_p4 }
 0x477   : > { %1658 = shalt.err (!%p1655_p6)
}
 0x478   : > { %s1689_s18 = smov 128   ;;  %s1690_s19 = smov 8  }
 0x479   : > { %1560 = dma.vmem_to_hbm [thread:$0]  (%p1911_p8), %s1166_s11, 2048, %s1952_s6, [#allocation5], %s1689_s18, %s1689_s18, %s1690_s19  }
 0x47a   : > { %1672 = dma.done.wait (%p1911_p8), [#allocation5], 2048  }
 0x47b   : > { %1674 = vsyncadd (%p1911_p8), [#allocation5], 4294965248 }
 0x47c PF: > { %s17_s23 = sadd.s32 1, %s1685_s23   ;;  %s1954_s21 = smov %s1681_s22 }
 0x47d   : > { %p14_p7 = scmp.ge.s32.totalorder %s17_s23, 4   ;;  %s1955_s22 = smov %s1957_s25 }
 0x47f   :  { %16 = sbr.rel (!%p14_p7) target bundleno = 2 (0x2), region = 89 }
 0x486   :  { %1181 = vsyncpa [#allocation5], 1 }
 0x487   :  { %1183 = vsyncpa [#allocation5 + $0x1], 1 }

</bundles_post_ra>
